<compile_context>
chip_gen: v5e
topology: v5e:2x2
jax: 0.10.0
libtpu: 0.0.40
codegen_flags: <defaults>
</compile_context>

<pallas_src>
import functools

import jax
import jax.numpy as jnp
import numpy as np
from jax.experimental import pallas as pl
from jax.experimental.pallas import tpu as pltpu


def _round_up(x, m):
    return ((x + m - 1) // m) * m


# ----------------------------------------------------------------------------
# Fused kernel: (GAP folded into base matmul) + middle fc + all heads.
# ----------------------------------------------------------------------------
def _fused_kernel(x_ref, w_eff_ref, bb_ref, wm_ref, bm_ref, wh_ref, bh_ref, o_ref):
    """
    x_ref : (TB, Kp)     flattened NCHW input tile (Kp = C*H*W padded to 128)
    w_eff : (Kp, F)      base weight with the 1/HW pooling folded in
    bb    : (1, F)       base bias
    wm    : (F, F)       middle fc weight        bm : (1, F) middle fc bias
    wh    : (F, Lp)      block-structured combined head weight (Lp = 128-pad)
    bh    : (1, Lp)      concatenated head biases
    o_ref : (TB, Lp)     all head logits, lane-dense
    """
    feat = jnp.dot(x_ref[...], w_eff_ref[...],
                   preferred_element_type=jnp.float32) + bb_ref[...]
    feat = jnp.dot(feat, wm_ref[...],
                   preferred_element_type=jnp.float32) + bm_ref[...]
    logits = jnp.dot(feat, wh_ref[...],
                     preferred_element_type=jnp.float32) + bh_ref[...]
    o_ref[...] = logits.astype(o_ref.dtype)


def _run_fused(x_flat, w_eff, b_base, w_mid, b_mid, w_heads, b_heads, tb):
    bp, kp = x_flat.shape
    f = w_eff.shape[1]
    lp = w_heads.shape[1]
    grid = (bp // tb,)
    return pl.pallas_call(
        _fused_kernel,
        out_shape=jax.ShapeDtypeStruct((bp, lp), jnp.float32),
        grid_spec=pltpu.PrefetchScalarGridSpec(
            num_scalar_prefetch=0,
            grid=grid,
            in_specs=[
                pl.BlockSpec((tb, kp), lambda b: (b, 0)),   # x tile per batch block
                pl.BlockSpec((kp, f), lambda b: (0, 0)),    # weights stay resident
                pl.BlockSpec((1, f), lambda b: (0, 0)),
                pl.BlockSpec((f, f), lambda b: (0, 0)),
                pl.BlockSpec((1, f), lambda b: (0, 0)),
                pl.BlockSpec((f, lp), lambda b: (0, 0)),
                pl.BlockSpec((1, lp), lambda b: (0, 0)),
            ],
            out_specs=pl.BlockSpec((tb, lp), lambda b: (b, 0)),
        ),
        compiler_params=pltpu.CompilerParams(
            dimension_semantics=("parallel",),
        ),
    )(x_flat, w_eff, b_base, w_mid, b_mid, w_heads, b_heads)


@functools.partial(jax.jit, static_argnames=("head_slices", "tb"))
def _forward(x, w_eff, b_base, w_mid, b_mid, w_heads, b_heads, *, head_slices, tb):
    B, C, H, W = x.shape
    k = C * H * W
    kp = w_eff.shape[0]
    x_flat = x.reshape(B, k)
    # Lane-dense contraction dim (zero columns contribute nothing).
    if kp != k:
        x_flat = jnp.pad(x_flat, ((0, 0), (0, kp - k)))
    # Pad batch to the sublane tile; padded rows are sliced off afterwards.
    bp = _round_up(B, tb)
    if bp != B:
        x_flat = jnp.pad(x_flat, ((0, bp - B), (0, 0)))

    logits = _run_fused(x_flat, w_eff, b_base, w_mid, b_mid, w_heads, b_heads, tb)
    return {attr: logits[:B, off:off + ln] for attr, off, ln in head_slices}


# ----------------------------------------------------------------------------
# Model wrapper
# ----------------------------------------------------------------------------
class MultiLabelModelPallas:
    def __init__(self, config, num_features, in_channels, key, drop_p=0.2):
        self.attributes = list(config["attributes"])
        self.label_nums = list(config["label_nums"])
        self.weights = list(config["weights"])
        assert len(self.attributes) >= 2
        assert len(self.attributes) == len(self.weights)
        self.num_features = num_features
        self.in_channels = in_channels
        self.drop_p = drop_p  # eval semantics only (dropout == identity)

        self.channels = [num_features] * len(self.attributes)
        if config["channels"]:
            self.channels = list(config["channels"])
        assert sum(self.channels) % num_features == 0

        keys = jax.random.split(key, 4 + 2 * len(self.attributes))

        def _uniform(k, shape, fan_in):
            bound = 1.0 / np.sqrt(fan_in)
            return jax.random.uniform(k, shape, jnp.float32, -bound, bound)

        # Synthetic base model after remove_head(): GAP + Linear(C -> num_features).
        self.w_base = _uniform(keys[0], (in_channels, num_features), in_channels)
        self.b_base = _uniform(keys[1], (1, num_features), in_channels)
        # Middle fc Linear(num_features -> num_features) (present since config['channels']).
        self.w_mid = _uniform(keys[2], (num_features, num_features), num_features)
        self.b_mid = _uniform(keys[3], (1, num_features), num_features)

        # Per-attribute head params (kept for the pure-JAX reference).
        self.head_params = {}
        for i, (attr, label_num, ch_in) in enumerate(
            zip(self.attributes, self.label_nums, self.channels)
        ):
            kw, kb = keys[4 + 2 * i], keys[5 + 2 * i]
            self.head_params[attr] = (
                _uniform(kw, (ch_in, label_num), ch_in),
                _uniform(kb, (1, label_num), ch_in),
            )

        # Combined block-structured head weight: one (F, L_total_padded) matmul
        # reproducing each head's feats[:, start:start+ch_in] @ W + b, including
        # the wraparound of start_channel modulo num_features.
        l_total = sum(self.label_nums)
        l_pad = _round_up(l_total, 128)          # lane-dense output store
        w_heads = np.zeros((num_features, l_pad), np.float32)
        b_heads = np.zeros((1, l_pad), np.float32)
        head_slices = []
        start_channel, col = 0, 0
        for attr, label_num, ch_in in zip(self.attributes, self.label_nums, self.channels):
            assert start_channel + ch_in <= num_features, (
                f"head '{attr}' channel window [{start_channel}, {start_channel + ch_in}) "
                f"exceeds feature width {num_features}"
            )
            w, b = self.head_params[attr]
            w_heads[start_channel:start_channel + ch_in, col:col + label_num] = np.asarray(w)
            b_heads[0, col:col + label_num] = np.asarray(b[0])
            head_slices.append((attr, col, label_num))
            start_channel = (start_channel + ch_in) % num_features
            col += label_num
        self.w_heads = jnp.asarray(w_heads)
        self.b_heads = jnp.asarray(b_heads)
        self.head_slices = tuple(head_slices)

        # Host-side cache of the pooling-folded, lane-padded base weight per (H, W)
        # so the repeat/pad never appears in the traced forward graph.
        self._w_eff_cache = {}
        self._w_base_np = np.asarray(self.w_base)

    def _get_w_eff(self, H, W):
        key = (H, W)
        if key not in self._w_eff_cache:
            hw = H * W
            w_eff = np.repeat(self._w_base_np / hw, hw, axis=0)     # (C*HW, F)
            k = self.in_channels * hw
            kp = _round_up(k, 128)
            if kp != k:
                w_eff = np.pad(w_eff, ((0, kp - k), (0, 0)))
            self._w_eff_cache[key] = jnp.asarray(w_eff)
        return self._w_eff_cache[key]

    def __call__(self, x):
        B, C, H, W = x.shape
        assert C == self.in_channels
        w_eff = self._get_w_eff(H, W)
        tb = min(128, _round_up(B, 8))
        return _forward(
            x, w_eff, self.b_base, self.w_mid, self.b_mid,
            self.w_heads, self.b_heads, head_slices=self.head_slices, tb=tb,
        )

    # Pure-JAX reference (mirrors the PyTorch forward) for validation.
    def reference(self, x):
        B, C, H, W = x.shape
        hp = jax.lax.Precision.HIGHEST
        pooled = jnp.mean(x.reshape(B, C, H * W), axis=-1)
        feat = jnp.dot(pooled, self.w_base, precision=hp) + self.b_base
        feat = jnp.dot(feat, self.w_mid, precision=hp) + self.b_mid
        out, start = {}, 0
        for attr, channel in zip(self.attributes, self.channels):
            attr_x = feat[:, start:start + channel]
            start = (start + channel) % feat.shape[1]
            w, b = self.head_params[attr]
            out[attr] = jnp.dot(attr_x, w, precision=hp) + b
        return out


# ----------------------------------------------------------------------------
# Main
# ----------------------------------------------------------------------------
if __name__ == "__main__":
    key = jax.random.PRNGKey(0)
    k_x, k_params = jax.random.split(key)

    B, C, H, W = 2, 4, 16, 16
    NUM_FEATURES = 32

    config = {
        "attributes": ["color", "category", "material"],
        "label_nums": [8, 16, 8],
        "weights": [1.0, 0.5, 0.5],
        "channels": [16, 16, 32],  # sum = 64, divisible by num_features = 32
    }

    x = jax.random.normal(k_x, (B, C, H, W), dtype=jnp.float32)

    model = MultiLabelModelPallas(config, NUM_FEATURES, C, k_params)

    out = model(x)
    out = jax.tree_util.tree_map(jax.block_until_ready, out)

    ref = model.reference(x)
    # Tolerance accounts for the different summation order (GAP folded into a
    # K=C*HW matmul) vs. the explicit mean-then-matmul reference.
    for attr, label_num in zip(config["attributes"], config["label_nums"]):
        assert out[attr].shape == (B, label_num)
        np.testing.assert_allclose(
            np.asarray(out[attr]), np.asarray(ref[attr]), rtol=5e-3, atol=1e-3
        )

    print("KERNEL_OK")
</pallas_src>

<mosaic_0001>
module attributes {stable_mosaic.version = 11 : i64} {
  func.func @_fused_kernel(%arg0: i32, %arg1: memref<8x1024xf32, #tpu.memory_space<vmem>>, %arg2: memref<1024x32xf32, #tpu.memory_space<vmem>>, %arg3: memref<1x32xf32, #tpu.memory_space<vmem>>, %arg4: memref<32x32xf32, #tpu.memory_space<vmem>>, %arg5: memref<1x32xf32, #tpu.memory_space<vmem>>, %arg6: memref<32x128xf32, #tpu.memory_space<vmem>>, %arg7: memref<1x128xf32, #tpu.memory_space<vmem>>, %arg8: memref<8x128xf32, #tpu.memory_space<vmem>>) attributes {dimension_semantics = [#tpu.dimension_semantics<parallel>], iteration_bounds = array<i64: 1>, scalar_prefetch = 0 : i64, scratch_operands = 0 : i64, tpu.core_type = #tpu.core_type<tc>, window_params = [{transform_indices = @transform_0, window_bounds = array<i64: 8, 1024>}, {pipeline_mode = #tpu.pipeline_mode<synchronous>, transform_indices = @transform_1, window_bounds = array<i64: 1024, 32>}, {pipeline_mode = #tpu.pipeline_mode<synchronous>, transform_indices = @transform_2, window_bounds = array<i64: 1, 32>}, {pipeline_mode = #tpu.pipeline_mode<synchronous>, transform_indices = @transform_3, window_bounds = array<i64: 32, 32>}, {pipeline_mode = #tpu.pipeline_mode<synchronous>, transform_indices = @transform_4, window_bounds = array<i64: 1, 32>}, {pipeline_mode = #tpu.pipeline_mode<synchronous>, transform_indices = @transform_5, window_bounds = array<i64: 32, 128>}, {pipeline_mode = #tpu.pipeline_mode<synchronous>, transform_indices = @transform_6, window_bounds = array<i64: 1, 128>}, {transform_indices = @transform_7, window_bounds = array<i64: 8, 128>}]} {
    %c0 = arith.constant 0 : index
    %c0_0 = arith.constant 0 : index
    %0 = vector.load %arg1[%c0, %c0_0] : memref<8x1024xf32, #tpu.memory_space<vmem>>, vector<8x1024xf32>
    %c0_1 = arith.constant 0 : index
    %c0_2 = arith.constant 0 : index
    %1 = vector.load %arg2[%c0_1, %c0_2] : memref<1024x32xf32, #tpu.memory_space<vmem>>, vector<1024x32xf32>
    %cst = arith.constant dense<0.000000e+00> : vector<8x32xf32>
    %2 = tpu.matmul %0, %1, %cst {dimension_numbers = #tpu.dot_dimension_numbers<[1], [0], [0], [1], [0, 0, 1, 1], [], []>} : vector<8x1024xf32>, vector<1024x32xf32>, vector<8x32xf32> -> vector<8x32xf32>
    %c0_3 = arith.constant 0 : index
    %c0_4 = arith.constant 0 : index
    %3 = vector.load %arg3[%c0_3, %c0_4] : memref<1x32xf32, #tpu.memory_space<vmem>>, vector<1x32xf32>
    %4 = vector.broadcast %3 : vector<1x32xf32> to vector<8x32xf32>
    %5 = arith.addf %2, %4 : vector<8x32xf32>
    %c0_5 = arith.constant 0 : index
    %c0_6 = arith.constant 0 : index
    %6 = vector.load %arg4[%c0_5, %c0_6] : memref<32x32xf32, #tpu.memory_space<vmem>>, vector<32x32xf32>
    %cst_7 = arith.constant dense<0.000000e+00> : vector<8x32xf32>
    %7 = tpu.matmul %5, %6, %cst_7 {dimension_numbers = #tpu.dot_dimension_numbers<[1], [0], [0], [1], [0, 0, 1, 1], [], []>} : vector<8x32xf32>, vector<32x32xf32>, vector<8x32xf32> -> vector<8x32xf32>
    %c0_8 = arith.constant 0 : index
    %c0_9 = arith.constant 0 : index
    %8 = vector.load %arg5[%c0_8, %c0_9] : memref<1x32xf32, #tpu.memory_space<vmem>>, vector<1x32xf32>
    %9 = vector.broadcast %8 : vector<1x32xf32> to vector<8x32xf32>
    %10 = arith.addf %7, %9 : vector<8x32xf32>
    %c0_10 = arith.constant 0 : index
    %c0_11 = arith.constant 0 : index
    %11 = vector.load %arg6[%c0_10, %c0_11] : memref<32x128xf32, #tpu.memory_space<vmem>>, vector<32x128xf32>
    %cst_12 = arith.constant dense<0.000000e+00> : vector<8x128xf32>
    %12 = tpu.matmul %10, %11, %cst_12 {dimension_numbers = #tpu.dot_dimension_numbers<[1], [0], [0], [1], [0, 0, 1, 1], [], []>} : vector<8x32xf32>, vector<32x128xf32>, vector<8x128xf32> -> vector<8x128xf32>
    %c0_13 = arith.constant 0 : index
    %c0_14 = arith.constant 0 : index
    %13 = vector.load %arg7[%c0_13, %c0_14] : memref<1x128xf32, #tpu.memory_space<vmem>>, vector<1x128xf32>
    %14 = vector.broadcast %13 : vector<1x128xf32> to vector<8x128xf32>
    %15 = arith.addf %12, %14 : vector<8x128xf32>
    %c0_15 = arith.constant 0 : index
    %c0_16 = arith.constant 0 : index
    %16 = vector.load %arg8[%c0_15, %c0_16] : memref<8x128xf32, #tpu.memory_space<vmem>>, vector<8x128xf32>
    tpu.vector_store %arg8[%c0_15, %c0_16], %15 {strides = array<i32>} : memref<8x128xf32, #tpu.memory_space<vmem>>, vector<8x128xf32>,
    return
  }
  func.func @transform_0(%arg0: i32) -> (i32, i32) {
    %c0_i32 = arith.constant 0 : i32
    %c0_i32_0 = arith.constant 0 : i32
    return %arg0, %c0_i32 : i32, i32
  }
  func.func @transform_1(%arg0: i32) -> (i32, i32) {
    %c0_i32 = arith.constant 0 : i32
    %c0_i32_0 = arith.constant 0 : i32
    %c0_i32_1 = arith.constant 0 : i32
    return %c0_i32, %c0_i32_0 : i32, i32
  }
  func.func @transform_2(%arg0: i32) -> (i32, i32) {
    %c0_i32 = arith.constant 0 : i32
    %c0_i32_0 = arith.constant 0 : i32
    %c0_i32_1 = arith.constant 0 : i32
    return %c0_i32, %c0_i32_0 : i32, i32
  }
  func.func @transform_3(%arg0: i32) -> (i32, i32) {
    %c0_i32 = arith.constant 0 : i32
    %c0_i32_0 = arith.constant 0 : i32
    %c0_i32_1 = arith.constant 0 : i32
    return %c0_i32, %c0_i32_0 : i32, i32
  }
  func.func @transform_4(%arg0: i32) -> (i32, i32) {
    %c0_i32 = arith.constant 0 : i32
    %c0_i32_0 = arith.constant 0 : i32
    %c0_i32_1 = arith.constant 0 : i32
    return %c0_i32, %c0_i32_0 : i32, i32
  }
  func.func @transform_5(%arg0: i32) -> (i32, i32) {
    %c0_i32 = arith.constant 0 : i32
    %c0_i32_0 = arith.constant 0 : i32
    %c0_i32_1 = arith.constant 0 : i32
    return %c0_i32, %c0_i32_0 : i32, i32
  }
  func.func @transform_6(%arg0: i32) -> (i32, i32) {
    %c0_i32 = arith.constant 0 : i32
    %c0_i32_0 = arith.constant 0 : i32
    %c0_i32_1 = arith.constant 0 : i32
    return %c0_i32, %c0_i32_0 : i32, i32
  }
  func.func @transform_7(%arg0: i32) -> (i32, i32) {
    %c0_i32 = arith.constant 0 : i32
    %c0_i32_0 = arith.constant 0 : i32
    return %arg0, %c0_i32 : i32, i32
  }
}

</mosaic_0001>

<bundles_post_ra>
// kernel: _forward.1
= control target key start
LH: loop header
LB: loop body
LE: loop exit
PB: predicated region body
PF: predicated region fallthrough
CT: control target
= control target key end

     0   :  { %vm334_vm0 = vcmask 261120   ;;  %s883_s1 = inlined_call_operand.vmem [shape: f32[1024,32], index: 1, kind: input, shape index: {}]   ;;  %s884_s2 = inlined_call_operand.vmem [shape: f32[1,32], index: 2, kind: input, shape index: {}]   ;;  %s885_s0 = inlined_call_operand.vmem [shape: f32[8,1024], index: 0, kind: input, shape index: {}]   ;;  %s886_s4 = inlined_call_operand.vmem [shape: f32[1,32], index: 4, kind: input, shape index: {}]   ;;  %s887_s3 = inlined_call_operand.vmem [shape: f32[32,32], index: 3, kind: input, shape index: {}]   ;;  %s888_s5 = inlined_call_operand.vmem [shape: f32[32,128], index: 5, kind: input, shape index: {}]   ;;  %s889_s6 = inlined_call_operand.vmem [shape: f32[1,128], index: 6, kind: input, shape index: {}]   ;;  %s890_s7 = inlined_call_operand.vmem [shape: f32[8,128], index: 7, kind: output, shape index: {}]  }
   0x1   :  { %v81_v0 = vld [vmem:[%s883_s1 + $0x178] sm:$0xff]  ;;  %v80_v2 = vld [vmem:[%s883_s1 + $0x170] sm:$0xff]  ;;  %v79_v6 = vld [vmem:[%s883_s1 + $0x168] sm:$0xff] }
   0x2   :  { %v49_v1 = vld [vmem:[%s883_s1 + $0x78] sm:$0xff]  ;;  %206 = vmatpush.msra.mxu2 %v81_v0  ;;  %v48_v4 = vld [vmem:[%s883_s1 + $0x70] sm:$0xff]  ;;  %v47_v8 = vld [vmem:[%s883_s1 + $0x68] sm:$0xff] }
   0x3   :  { %166 = vmatpush.msra.mxu0 %v49_v1  ;;  %v97_v3 = vld [vmem:[%s883_s1 + $0x1f8] sm:$0xff]  ;;  %v96_v7 = vld [vmem:[%s883_s1 + $0x1f0] sm:$0xff]  ;;  %v95_v10 = vld [vmem:[%s883_s1 + $0x1e8] sm:$0xff] }
   0x4   :  { %v65_v5 = vld [vmem:[%s883_s1 + $0xf8] sm:$0xff]  ;;  %226 = vmatpush.msra.mxu3 %v97_v3  ;;  %207 = vmatpush.msra.mxu2 %v80_v2  ;;  %v64_v9 = vld [vmem:[%s883_s1 + $0xf0] sm:$0xff]  ;;  %v78_v11 = vld [vmem:[%s883_s1 + $0x160] sm:$0xff] }
   0x5   :  { %186 = vmatpush.msra.mxu1 %v65_v5  ;;  %167 = vmatpush.msra.mxu0 %v48_v4  ;;  %v46_v12 = vld [vmem:[%s883_s1 + $0x60] sm:$0xff]  ;;  %v63_v13 = vld [vmem:[%s883_s1 + $0xe8] sm:$0xff]  ;;  %v77_v16 = vld [vmem:[%s883_s1 + $0x158] sm:$0xff] }
   0x6   :  { %227 = vmatpush.msra.mxu3 %v96_v7  ;;  %208 = vmatpush.msra.mxu2 %v79_v6  ;;  %v94_v14 = vld [vmem:[%s883_s1 + $0x1e0] sm:$0xff]  ;;  %v45_v17 = vld [vmem:[%s883_s1 + $0x58] sm:$0xff]  ;;  %v76_v20 = vld [vmem:[%s883_s1 + $0x150] sm:$0xff] }
   0x7   :  { %187 = vmatpush.msra.mxu1 %v64_v9  ;;  %168 = vmatpush.msra.mxu0 %v47_v8  ;;  %v62_v15 = vld [vmem:[%s883_s1 + $0xe0] sm:$0xff]  ;;  %v93_v18 = vld [vmem:[%s883_s1 + $0x1d8] sm:$0xff]  ;;  %v44_v21 = vld [vmem:[%s883_s1 + $0x50] sm:$0xff] }
   0x8   :  { %228 = vmatpush.msra.mxu3 %v95_v10  ;;  %209 = vmatpush.msra.mxu2 %v78_v11  ;;  %v61_v19 = vld [vmem:[%s883_s1 + $0xd8] sm:$0xff]  ;;  %v92_v22 = vld [vmem:[%s883_s1 + $0x1d0] sm:$0xff]  ;;  %v75_v24 = vld [vmem:[%s883_s1 + $0x148] sm:$0xff] }
   0x9   :  { %188 = vmatpush.msra.mxu1 %v63_v13  ;;  %169 = vmatpush.msra.mxu0 %v46_v12  ;;  %v60_v23 = vld [vmem:[%s883_s1 + $0xd0] sm:$0xff]  ;;  %v43_v25 = vld [vmem:[%s883_s1 + $0x48] sm:$0xff]  ;;  %v74_v28 = vld [vmem:[%s883_s1 + $0x140] sm:$0xff] }
   0xa   :  { %229 = vmatpush.msra.mxu3 %v94_v14  ;;  %210 = vmatpush.msra.mxu2 %v77_v16  ;;  %v91_v26 = vld [vmem:[%s883_s1 + $0x1c8] sm:$0xff]  ;;  %v42_v29 = vld [vmem:[%s883_s1 + $0x40] sm:$0xff]  ;;  %v73_v32 = vld [vmem:[%s883_s1 + $0x138] sm:$0xff] }
   0xb   :  { %189 = vmatpush.msra.mxu1 %v62_v15  ;;  %170 = vmatpush.msra.mxu0 %v45_v17  ;;  %v59_v27 = vld [vmem:[%s883_s1 + $0xc8] sm:$0xff]  ;;  %v90_v30 = vld [vmem:[%s883_s1 + $0x1c0] sm:$0xff]  ;;  %v41_v33 = vld [vmem:[%s883_s1 + $0x38] sm:$0xff] }
   0xc   :  { %230 = vmatpush.msra.mxu3 %v93_v18  ;;  %211 = vmatpush.msra.mxu2 %v76_v20  ;;  %v58_v31 = vld [vmem:[%s883_s1 + $0xc0] sm:$0xff]  ;;  %v89_v34 = vld [vmem:[%s883_s1 + $0x1b8] sm:$0xff]  ;;  %v72_v36 = vld [vmem:[%s883_s1 + $0x130] sm:$0xff] }
   0xd   :  { %190 = vmatpush.msra.mxu1 %v61_v19  ;;  %171 = vmatpush.msra.mxu0 %v44_v21  ;;  %v57_v35 = vld [vmem:[%s883_s1 + $0xb8] sm:$0xff]  ;;  %v40_v37 = vld [vmem:[%s883_s1 + $0x30] sm:$0xff]  ;;  %v71_v40 = vld [vmem:[%s883_s1 + $0x128] sm:$0xff] }
   0xe   :  { %231 = vmatpush.msra.mxu3 %v92_v22  ;;  %212 = vmatpush.msra.mxu2 %v75_v24  ;;  %v88_v38 = vld [vmem:[%s883_s1 + $0x1b0] sm:$0xff]  ;;  %v39_v41 = vld [vmem:[%s883_s1 + $0x28] sm:$0xff]  ;;  %v70_v44 = vld [vmem:[%s883_s1 + $0x120] sm:$0xff] }
   0xf   :  { %191 = vmatpush.msra.mxu1 %v60_v23  ;;  %172 = vmatpush.msra.mxu0 %v43_v25  ;;  %v56_v39 = vld [vmem:[%s883_s1 + $0xb0] sm:$0xff]  ;;  %v87_v42 = vld [vmem:[%s883_s1 + $0x1a8] sm:$0xff]  ;;  %v38_v45 = vld [vmem:[%s883_s1 + $0x20] sm:$0xff] }
  0x10   :  { %232 = vmatpush.msra.mxu3 %v91_v26  ;;  %213 = vmatpush.msra.mxu2 %v74_v28  ;;  %v55_v43 = vld [vmem:[%s883_s1 + $0xa8] sm:$0xff]  ;;  %v86_v46 = vld [vmem:[%s883_s1 + $0x1a0] sm:$0xff]  ;;  %v69_v48 = vld [vmem:[%s883_s1 + $0x118] sm:$0xff] }
  0x11   :  { %192 = vmatpush.msra.mxu1 %v59_v27  ;;  %173 = vmatpush.msra.mxu0 %v42_v29  ;;  %v54_v47 = vld [vmem:[%s883_s1 + $0xa0] sm:$0xff]  ;;  %v37_v49 = vld [vmem:[%s883_s1 + $0x18] sm:$0xff]  ;;  %v68_v52 = vld [vmem:[%s883_s1 + $0x110] sm:$0xff] }
  0x12   :  { %233 = vmatpush.msra.mxu3 %v90_v30  ;;  %214 = vmatpush.msra.mxu2 %v73_v32  ;;  %v85_v50 = vld [vmem:[%s883_s1 + $0x198] sm:$0xff]  ;;  %v36_v53 = vld [vmem:[%s883_s1 + $0x10] sm:$0xff]  ;;  %v67_v56 = vld [vmem:[%s883_s1 + $0x108] sm:$0xff] }
  0x13   :  { %193 = vmatpush.msra.mxu1 %v58_v31  ;;  %174 = vmatpush.msra.mxu0 %v41_v33  ;;  %v53_v51 = vld [vmem:[%s883_s1 + $0x98] sm:$0xff]  ;;  %v84_v54 = vld [vmem:[%s883_s1 + $0x190] sm:$0xff]  ;;  %v35_v57 = vld [vmem:[%s883_s1 + $0x8] sm:$0xff] }
  0x14   :  { %234 = vmatpush.msra.mxu3 %v89_v34  ;;  %215 = vmatpush.msra.mxu2 %v72_v36  ;;  %v52_v55 = vld [vmem:[%s883_s1 + $0x90] sm:$0xff]  ;;  %v83_v58 = vld [vmem:[%s883_s1 + $0x188] sm:$0xff]  ;;  %v66_v60 = vld [vmem:[%s883_s1 + $0x100] sm:$0xff] }
  0x15   :  { %194 = vmatpush.msra.mxu1 %v57_v35  ;;  %175 = vmatpush.msra.mxu0 %v40_v37  ;;  %v51_v59 = vld [vmem:[%s883_s1 + $0x88] sm:$0xff]  ;;  %v34_v61 = vld [vmem:[%s883_s1] sm:$0xff]  ;;  %v145_v62 = vld [vmem:[%s883_s1 + $0x378] sm:$0xff] }
  0x16   :  { %235 = vmatpush.msra.mxu3 %v88_v38  ;;  %216 = vmatpush.msra.mxu2 %v71_v40  ;;  %v82_v63 = vld [vmem:[%s883_s1 + $0x180] sm:$0xff]  ;;  %v113_v0 = vld [vmem:[%s883_s1 + $0x278] sm:$0xff]  ;;  %v144_v2 = vld [vmem:[%s883_s1 + $0x370] sm:$0xff] }
  0x17   :  { %195 = vmatpush.msra.mxu1 %v56_v39  ;;  %176 = vmatpush.msra.mxu0 %v39_v41  ;;  %v161_v1 = vld [vmem:[%s883_s1 + $0x3f8] sm:$0xff]  ;;  %v50_v3 = vld [vmem:[%s883_s1 + $0x80] sm:$0xff]  ;;  %v112_v4 = vld [vmem:[%s883_s1 + $0x270] sm:$0xff] }
  0x18   :  { %236 = vmatpush.msra.mxu3 %v87_v42  ;;  %217 = vmatpush.msra.mxu2 %v70_v44  ;;  %v129_v5 = vld [vmem:[%s883_s1 + $0x2f8] sm:$0xff]  ;;  %v143_v6 = vld [vmem:[%s883_s1 + $0x368] sm:$0xff]  ;;  %v160_v7 = vld [vmem:[%s883_s1 + $0x3f0] sm:$0xff] }
  0x19   :  { %196 = vmatpush.msra.mxu1 %v55_v43  ;;  %177 = vmatpush.msra.mxu0 %v38_v45  ;;  %v111_v8 = vld [vmem:[%s883_s1 + $0x268] sm:$0xff]  ;;  %v128_v9 = vld [vmem:[%s883_s1 + $0x2f0] sm:$0xff]  ;;  %v142_v10 = vld [vmem:[%s883_s1 + $0x360] sm:$0xff] }
  0x1a   :  { %237 = vmatpush.msra.mxu3 %v86_v46  ;;  %218 = vmatpush.msra.mxu2 %v69_v48  ;;  %v159_v11 = vld [vmem:[%s883_s1 + $0x3e8] sm:$0xff]  ;;  %v110_v12 = vld [vmem:[%s883_s1 + $0x260] sm:$0xff]  ;;  %v141_v14 = vld [vmem:[%s883_s1 + $0x358] sm:$0xff] }
  0x1b   :  { %197 = vmatpush.msra.mxu1 %v54_v47  ;;  %178 = vmatpush.msra.mxu0 %v37_v49  ;;  %v127_v13 = vld [vmem:[%s883_s1 + $0x2e8] sm:$0xff]  ;;  %v158_v15 = vld [vmem:[%s883_s1 + $0x3e0] sm:$0xff]  ;;  %v109_v16 = vld [vmem:[%s883_s1 + $0x258] sm:$0xff] }
  0x1c   :  { %238 = vmatpush.msra.mxu3 %v85_v50  ;;  %219 = vmatpush.msra.mxu2 %v68_v52  ;;  %v126_v17 = vld [vmem:[%s883_s1 + $0x2e0] sm:$0xff]  ;;  %v140_v18 = vld [vmem:[%s883_s1 + $0x350] sm:$0xff]  ;;  %v157_v19 = vld [vmem:[%s883_s1 + $0x3d8] sm:$0xff] }
  0x1d   :  { %198 = vmatpush.msra.mxu1 %v53_v51  ;;  %179 = vmatpush.msra.mxu0 %v36_v53  ;;  %v108_v20 = vld [vmem:[%s883_s1 + $0x250] sm:$0xff]  ;;  %v125_v21 = vld [vmem:[%s883_s1 + $0x2d8] sm:$0xff]  ;;  %v139_v22 = vld [vmem:[%s883_s1 + $0x348] sm:$0xff] }
  0x1e   :  { %239 = vmatpush.msra.mxu3 %v84_v54  ;;  %220 = vmatpush.msra.mxu2 %v67_v56  ;;  %v156_v23 = vld [vmem:[%s883_s1 + $0x3d0] sm:$0xff]  ;;  %v107_v24 = vld [vmem:[%s883_s1 + $0x248] sm:$0xff]  ;;  %v138_v26 = vld [vmem:[%s883_s1 + $0x340] sm:$0xff] }
  0x1f   :  { %199 = vmatpush.msra.mxu1 %v52_v55  ;;  %180 = vmatpush.msra.mxu0 %v35_v57  ;;  %v124_v25 = vld [vmem:[%s883_s1 + $0x2d0] sm:$0xff]  ;;  %v155_v27 = vld [vmem:[%s883_s1 + $0x3c8] sm:$0xff]  ;;  %v106_v28 = vld [vmem:[%s883_s1 + $0x240] sm:$0xff] }
  0x20   :  { %240 = vmatpush.msra.mxu3 %v83_v58  ;;  %221 = vmatpush.msra.mxu2 %v66_v60  ;;  %v123_v29 = vld [vmem:[%s883_s1 + $0x2c8] sm:$0xff]  ;;  %v137_v30 = vld [vmem:[%s883_s1 + $0x338] sm:$0xff]  ;;  %v154_v31 = vld [vmem:[%s883_s1 + $0x3c0] sm:$0xff] }
  0x21   :  { %200 = vmatpush.msra.mxu1 %v51_v59  ;;  %181 = vmatpush.msra.mxu0 %v34_v61  ;;  %v105_v32 = vld [vmem:[%s883_s1 + $0x238] sm:$0xff]  ;;  %v122_v33 = vld [vmem:[%s883_s1 + $0x2c0] sm:$0xff]  ;;  %v136_v34 = vld [vmem:[%s883_s1 + $0x330] sm:$0xff] }
  0x22   :  { %286 = vmatpush.msrb.mxu2 %v145_v62  ;;  %241 = vmatpush.msra.mxu3 %v82_v63  ;;  %v153_v35 = vld [vmem:[%s883_s1 + $0x3b8] sm:$0xff]  ;;  %v104_v36 = vld [vmem:[%s883_s1 + $0x230] sm:$0xff]  ;;  %v135_v38 = vld [vmem:[%s883_s1 + $0x328] sm:$0xff] }
  0x23   :  { %246 = vmatpush.msrb.mxu0 %v113_v0  ;;  %201 = vmatpush.msra.mxu1 %v50_v3  ;;  %v121_v37 = vld [vmem:[%s883_s1 + $0x2b8] sm:$0xff]  ;;  %v152_v39 = vld [vmem:[%s883_s1 + $0x3b0] sm:$0xff]  ;;  %v103_v40 = vld [vmem:[%s883_s1 + $0x228] sm:$0xff] }
  0x24   :  { %306 = vmatpush.msrb.mxu3 %v161_v1  ;;  %287 = vmatpush.msrb.mxu2 %v144_v2  ;;  %v120_v41 = vld [vmem:[%s883_s1 + $0x2b0] sm:$0xff]  ;;  %v134_v42 = vld [vmem:[%s883_s1 + $0x320] sm:$0xff]  ;;  %v151_v43 = vld [vmem:[%s883_s1 + $0x3a8] sm:$0xff] }
  0x25   :  { %247 = vmatpush.msrb.mxu0 %v112_v4  ;;  %266 = vmatpush.msrb.mxu1 %v129_v5  ;;  %v28_v44 = vld [vmem:[%s885_s0 + $0x10] sm:$0xff]  ;;  %v102_v45 = vld [vmem:[%s883_s1 + $0x220] sm:$0xff]  ;;  %v119_v46 = vld [vmem:[%s883_s1 + $0x2a8] sm:$0xff] }
  0x26   :  { %288 = vmatpush.msrb.mxu2 %v143_v6  ;;  %307 = vmatpush.msrb.mxu3 %v160_v7  ;;  %v133_v47 = vld [vmem:[%s883_s1 + $0x318] sm:$0xff]  ;;  %v150_v48 = vld [vmem:[%s883_s1 + $0x3a0] sm:$0xff]  ;;  %v132_v53 = vld [vmem:[%s883_s1 + $0x310] sm:$0xff] }
  0x27   :  { %248 = vmatpush.msrb.mxu0 %v111_v8  ;;  %267 = vmatpush.msrb.mxu1 %v128_v9  ;;  %v26_v49 = vld [vmem:[%s885_s0] sm:$0xff]  ;;  %v29_v50 = vld [vmem:[%s885_s0 + $0x18] sm:$0xff]  ;;  %v27_v55 = vld [vmem:[%s885_s0 + $0x8] sm:$0xff] }
  0x28   :  { %289 = vmatpush.msrb.mxu2 %v142_v10  ;;  %308 = vmatpush.msrb.mxu3 %v159_v11  ;;  %v101_v51 = vld [vmem:[%s883_s1 + $0x218] sm:$0xff]  ;;  %v118_v52 = vld [vmem:[%s883_s1 + $0x2a0] sm:$0xff]  ;;  %v100_v56 = vld [vmem:[%s883_s1 + $0x210] sm:$0xff] }
  0x29   :  { %249 = vmatpush.msrb.mxu0 %v110_v12  ;;  %268 = vmatpush.msrb.mxu1 %v127_v13  ;;  %v149_v54 = vld [vmem:[%s883_s1 + $0x398] sm:$0xff]  ;;  %v131_v58 = vld [vmem:[%s883_s1 + $0x308] sm:$0xff]  ;;  %v148_v59 = vld [vmem:[%s883_s1 + $0x390] sm:$0xff] }
  0x2a   :  { %290 = vmatpush.msrb.mxu2 %v141_v14  ;;  %309 = vmatpush.msrb.mxu3 %v158_v15  ;;  %v117_v57 = vld [vmem:[%s883_s1 + $0x298] sm:$0xff]  ;;  %v99_v60 = vld [vmem:[%s883_s1 + $0x208] sm:$0xff]  ;;  %v116_v61 = vld [vmem:[%s883_s1 + $0x290] sm:$0xff] }
  0x2b   :  { %250 = vmatpush.msrb.mxu0 %v109_v16  ;;  %269 = vmatpush.msrb.mxu1 %v126_v17  ;;  %v130_v62 = vld [vmem:[%s883_s1 + $0x300] sm:$0xff]  ;;  %v147_v63 = vld [vmem:[%s883_s1 + $0x388] sm:$0xff]  ;;  %v32_v0 = vld [vmem:[%s885_s0 + $0x30] sm:$0xff] }
  0x2c   :  { %291 = vmatpush.msrb.mxu2 %v140_v18  ;;  %310 = vmatpush.msrb.mxu3 %v157_v19  ;;  %v98_v1 = vld [vmem:[%s883_s1 + $0x200] sm:$0xff]  ;;  %v115_v2 = vld [vmem:[%s883_s1 + $0x288] sm:$0xff]  ;;  %v33_v5 = vld [vmem:[%s885_s0 + $0x38] sm:$0xff] }
  0x2d   :  { %251 = vmatpush.msrb.mxu0 %v108_v20  ;;  %270 = vmatpush.msrb.mxu1 %v125_v21  ;;  %v146_v3 = vld [vmem:[%s883_s1 + $0x380] sm:$0xff]  ;;  %v31_v7 = vld [vmem:[%s885_s0 + $0x28] sm:$0xff]  ;;  %v329_v8 = vld [vmem:[%s887_s3 + $0x18] sm:$0xff] }
  0x2e   :  { %292 = vmatpush.msrb.mxu2 %v139_v22  ;;  %311 = vmatpush.msrb.mxu3 %v156_v23  ;;  %v30_v4 = vld [vmem:[%s885_s0 + $0x20] sm:$0xff]  ;;  %v328_v9 = vld [vmem:[%s887_s3 + $0x10] sm:$0xff]  ;;  %v327_v10 = vld [vmem:[%s887_s3 + $0x8] sm:$0xff] }
  0x2f   :  { %252 = vmatpush.msrb.mxu0 %v107_v24  ;;  %271 = vmatpush.msrb.mxu1 %v124_v25  ;;  %v114_v6 = vld [vmem:[%s883_s1 + $0x280] sm:$0xff]  ;;  %v361_v12 = vld [vmem:[%s888_s5 + $0x18] sm:$0xff]  ;;  %v360_v13 = vld [vmem:[%s888_s5 + $0x10] sm:$0xff] }
  0x30   :  { %293 = vmatpush.msrb.mxu2 %v138_v26  ;;  %312 = vmatpush.msrb.mxu3 %v155_v27  ;;  %v326_v11 = vld [vmem:[%s887_s3] sm:$0xff]  ;;  %v359_v14 = vld [vmem:[%s888_s5 + $0x8] sm:$0xff] }
  0x31   :  { %253 = vmatpush.msrb.mxu0 %v106_v28  ;;  %272 = vmatpush.msrb.mxu1 %v123_v29  ;;  %v396_v15 = vld [vmem:[%s884_s2] ss:$0 sm:$0xff] }
  0x32   :  { %294 = vmatpush.msrb.mxu2 %v137_v30  ;;  %313 = vmatpush.msrb.mxu3 %v154_v31 }
  0x33   :  { %254 = vmatpush.msrb.mxu0 %v105_v32  ;;  %273 = vmatpush.msrb.mxu1 %v122_v33  ;;  %v358_v32 = vld [vmem:[%s888_s5] sm:$0xff] }
  0x34   :  { %295 = vmatpush.msrb.mxu2 %v136_v34  ;;  %314 = vmatpush.msrb.mxu3 %v153_v35  ;;  %v397_v33 = vld [vmem:[%s886_s4] ss:$0 sm:$0xff] }
  0x35   :  { %255 = vmatpush.msrb.mxu0 %v104_v36  ;;  %274 = vmatpush.msrb.mxu1 %v121_v37  ;;  %v398_v36 = vld [vmem:[%s889_s6] ss:$0 sm:$0xff] }
  0x36   :  { %296 = vmatpush.msrb.mxu2 %v135_v38  ;;  %315 = vmatpush.msrb.mxu3 %v152_v39 }
  0x37   :  { %256 = vmatpush.msrb.mxu0 %v103_v40  ;;  %275 = vmatpush.msrb.mxu1 %v120_v41 }
  0x38   :  { %297 = vmatpush.msrb.mxu2 %v134_v42  ;;  %316 = vmatpush.msrb.mxu3 %v151_v43 }
  0x39   :  { %222 = vmatmul.f32.vlgmr.msra.gmra.mxu2 %v28_v44  ;;  %257 = vmatpush.msrb.mxu0 %v102_v45 }
  0x3a   :  { %276 = vmatpush.msrb.mxu1 %v119_v46  ;;  %298 = vmatpush.msrb.mxu2 %v133_v47 }
  0x3b   :  { %317 = vmatpush.msrb.mxu3 %v150_v48  ;;  %182 = vmatmul.f32.vlgmr.msra.gmra.mxu0 %v26_v49 }
  0x3c   :  { %242 = vmatmul.f32.vlgmr.msra.gmra.mxu3 %v29_v50  ;;  %258 = vmatpush.msrb.mxu0 %v101_v51 }
  0x3d   :  { %277 = vmatpush.msrb.mxu1 %v118_v52  ;;  %299 = vmatpush.msrb.mxu2 %v132_v53 }
  0x3e   :  { %318 = vmatpush.msrb.mxu3 %v149_v54  ;;  %202 = vmatmul.f32.vlgmr.msra.gmra.mxu1 %v27_v55 }
  0x3f   :  { %259 = vmatpush.msrb.mxu0 %v100_v56  ;;  %278 = vmatpush.msrb.mxu1 %v117_v57 }
  0x40   :  { %300 = vmatpush.msrb.mxu2 %v131_v58  ;;  %319 = vmatpush.msrb.mxu3 %v148_v59 }
  0x41   :  { %260 = vmatpush.msrb.mxu0 %v99_v60  ;;  %279 = vmatpush.msrb.mxu1 %v116_v61 }
  0x42   :  { %301 = vmatpush.msrb.mxu2 %v130_v62  ;;  %320 = vmatpush.msrb.mxu3 %v147_v63 }
  0x43   :  { %302 = vmatmul.f32.vlgmr.msrb.gmra.mxu2 %v32_v0  ;;  %261 = vmatpush.msrb.mxu0 %v98_v1 }
  0x44   :  { %280 = vmatpush.msrb.mxu1 %v115_v2  ;;  %321 = vmatpush.msrb.mxu3 %v146_v3 }
  0x45   :  { %262 = vmatmul.f32.vlgmr.msrb.gmra.mxu0 %v30_v4  ;;  %322 = vmatmul.f32.vlgmr.msrb.gmra.mxu3 %v33_v5 }
  0x46   :  { %281 = vmatpush.msrb.mxu1 %v114_v6  ;;  %350 = vmatpush.msra.mxu0 %v329_v8 }
  0x47   :  { %282 = vmatmul.f32.vlgmr.msrb.gmra.mxu1 %v31_v7 }
  0x48   :  { %351 = vmatpush.msra.mxu0 %v328_v9  ;;  %381 = vmatpush.msra.mxu1 %v361_v12 }
  0x4a   :  { %352 = vmatpush.msra.mxu0 %v327_v10  ;;  %382 = vmatpush.msra.mxu1 %v360_v13 }
  0x4c   :  { %353 = vmatpush.msra.mxu0 %v326_v11  ;;  %383 = vmatpush.msra.mxu1 %v359_v14 }
  0x4e   :  { %384 = vmatpush.msra.mxu1 %v358_v32 }
  0xb8   :  { %v183_v16 = vpop.f32.mrf.mxu0 }
  0xb9   :  { %v184_v17 = vadd.f32 %v396_v15, %v183_v16 }
  0xbb   :  { %v203_v18 = vpop.f32.mrf.mxu1 }
  0xbc   :  { %v204_v19 = vadd.f32 %v203_v18, %v184_v17  ;;  %v223_v20 = vpop.f32.mrf.mxu2 }
  0xbe   :  { %v224_v21 = vadd.f32 %v223_v20, %v204_v19 }
  0xbf   :  { %v243_v22 = vpop.f32.mrf.mxu3 }
  0xc0   :  { %v244_v23 = vadd.f32 %v243_v22, %v224_v21 }
  0xc2   :  { %v263_v24 = vpop.f32.mrf.mxu0 }
  0xc3   :  { %v264_v25 = vadd.f32 %v263_v24, %v244_v23 }
  0xc4   :  { %v283_v26 = vpop.f32.mrf.mxu1 }
  0xc5   :  { %v284_v27 = vadd.f32 %v283_v26, %v264_v25 }
  0xc6   :  { %v303_v28 = vpop.f32.mrf.mxu2 }
  0xc7   :  { %v304_v29 = vadd.f32 %v303_v28, %v284_v27 }
  0xc8   :  { %v323_v30 = vpop.f32.mrf.mxu3 }
  0xc9   :  { %v324_v31 = vadd.f32 %v323_v30, %v304_v29 }
  0xcb   :  { %394 = vmatmul.msk.f32.vlgmr.msra.gmra.mxu0 %vm334_vm0, %v324_v31 }
 0x148   :  { %v355_v34 = vpop.f32.mrf.mxu0 }
 0x149   :  { %v356_v35 = vadd.f32 %v397_v33, %v355_v34 }
 0x14b   :  { %395 = vmatmul.msk.f32.vlgmr.msra.gmra.mxu1 %vm334_vm0, %v356_v35 }
 0x1c8   :  { %v386_v37 = vpop.f32.mrf.mxu1 }
 0x1c9   :  { %v387_v38 = vadd.f32 %v398_v36, %v386_v37 }
 0x1cb   :  { %389 = vst [vmem:[%s890_s7] sm:$0xff] %v387_v38 }

</bundles_post_ra>
